<compile_context>
chip_gen: v5e
topology: v5e:2x2
jax: 0.10.0
libtpu: 0.0.40
codegen_flags: <defaults>
</compile_context>

<pallas_src>
import jax
import jax.numpy as jnp
from jax.experimental import pallas as pl
from jax.experimental.pallas import tpu as pltpu

LANE = 128


def _round_up(x, m):
    return ((x + m - 1) // m) * m


def decoder_kernel(s_ref, p_ref,
                   w1s_ref, w1p_ref, b1_ref,   # Linearlayer layer 0: (c+p) -> hid (split)
                   w2_ref, b2_ref,             # Linearlayer layer 1: hid   -> ft
                   w3_ref, b3_ref,             # linear2:             ft    -> ft
                   o_ref):
    # concat([s, p], 1) @ W1  ==  s @ W1[:c_dim] + p @ W1[c_dim:]  (no lane concat)
    h = jnp.dot(s_ref[...], w1s_ref[...], preferred_element_type=jnp.float32)
    h = h + jnp.dot(p_ref[...], w1p_ref[...], preferred_element_type=jnp.float32)
    h = jnp.maximum(h + b1_ref[...], 0.0)                       # ReLU inside Linearlayer

    h = jnp.dot(h, w2_ref[...], preferred_element_type=jnp.float32) + b2_ref[...]
    h = jnp.maximum(h, 0.0)                                     # F.relu(recons)

    o = jnp.dot(h, w3_ref[...], preferred_element_type=jnp.float32) + b3_ref[...]
    o_ref[...] = o.astype(o_ref.dtype)


def decoder_forward(s, p, params, *, tile_rows=1024):
    w1, b1, w2, b2, w3, b3 = params
    N, c_dim = s.shape
    _, p_dim = p.shape
    in_dim = c_dim + p_dim
    hid = w1.shape[1]
    ft = w3.shape[1]

    # --- lane-dense padding of the feature dims (zero pad -> identical math) ---
    hid_p = _round_up(hid, LANE)
    ft_p = _round_up(ft, LANE)

    w1_pad = jnp.zeros((in_dim, hid_p), w1.dtype).at[:, :hid].set(w1)
    w1s = w1_pad[:c_dim]                       # (c_dim, hid_p)
    w1p = w1_pad[c_dim:]                       # (p_dim, hid_p)
    b1p = jnp.zeros((1, hid_p), b1.dtype).at[:, :hid].set(b1)
    w2p = jnp.zeros((hid_p, ft_p), w2.dtype).at[:hid, :ft].set(w2)
    b2p = jnp.zeros((1, ft_p), b2.dtype).at[:, :ft].set(b2)
    w3p = jnp.zeros((ft_p, ft_p), w3.dtype).at[:ft, :ft].set(w3)
    b3p = jnp.zeros((1, ft_p), b3.dtype).at[:, :ft].set(b3)

    # --- row tiling: big tiles amortize per-grid-step overhead; handle remainder ---
    tm = min(tile_rows, _round_up(N, 8))
    n_pad = _round_up(N, tm)
    if n_pad != N:
        s = jnp.zeros((n_pad, c_dim), s.dtype).at[:N].set(s)
        p = jnp.zeros((n_pad, p_dim), p.dtype).at[:N].set(p)
    grid = (n_pad // tm,)

    full = lambda i: (0, 0)   # weights/biases: same (whole) block every grid step

    flops = 2 * n_pad * (in_dim * hid_p + hid_p * ft_p + ft_p * ft_p)
    bytes_accessed = 4 * (s.size + p.size + w1_pad.size + b1p.size + w2p.size
                          + b2p.size + w3p.size + b3p.size + n_pad * ft_p)
    cost = pl.CostEstimate(flops=flops, transcendentals=0,
                           bytes_accessed=bytes_accessed)

    out = pl.pallas_call(
        decoder_kernel,
        out_shape=jax.ShapeDtypeStruct((n_pad, ft_p), s.dtype),
        grid_spec=pltpu.PrefetchScalarGridSpec(
            num_scalar_prefetch=0,
            grid=grid,
            in_specs=[
                pl.BlockSpec((tm, c_dim), lambda i: (i, 0)),
                pl.BlockSpec((tm, p_dim), lambda i: (i, 0)),
                pl.BlockSpec((c_dim, hid_p), full),
                pl.BlockSpec((p_dim, hid_p), full),
                pl.BlockSpec((1, hid_p), full),
                pl.BlockSpec((hid_p, ft_p), full),
                pl.BlockSpec((1, ft_p), full),
                pl.BlockSpec((ft_p, ft_p), full),
                pl.BlockSpec((1, ft_p), full),
            ],
            out_specs=pl.BlockSpec((tm, ft_p), lambda i: (i, 0)),
        ),
        compiler_params=pltpu.CompilerParams(
            dimension_semantics=("parallel",),
            vmem_limit_bytes=64 * 1024 * 1024),
        cost_estimate=cost,
    )(s, p, w1s, w1p, b1p, w2p, b2p, w3p, b3p)

    return out[:N, :ft]


def init_params(key, c_dim, p_dim, hid_units, ft_size):
    """Deterministic synthetic params (shapes match the module's __init__)."""
    ks = jax.random.split(key, 6)
    in_dim = c_dim + p_dim
    w1 = jax.random.normal(ks[0], (in_dim, hid_units), jnp.float32) * 0.1
    b1 = jax.random.normal(ks[1], (1, hid_units), jnp.float32) * 0.01
    w2 = jax.random.normal(ks[2], (hid_units, ft_size), jnp.float32) * 0.1
    b2 = jax.random.normal(ks[3], (1, ft_size), jnp.float32) * 0.01
    w3 = jax.random.normal(ks[4], (ft_size, ft_size), jnp.float32) * 0.1
    b3 = jax.random.normal(ks[5], (1, ft_size), jnp.float32) * 0.01
    return (w1, b1, w2, b2, w3, b3)


def decoder_reference(s, p, params):
    """Pure-JAX reference for correctness checking."""
    w1, b1, w2, b2, w3, b3 = params
    x = jnp.concatenate([s, p], axis=1)
    h = jnp.maximum(x @ w1 + b1, 0.0)   # Linearlayer (decolayer=2)
    h = jnp.maximum(h @ w2 + b2, 0.0)   # second layer + F.relu
    return h @ w3 + b3                  # linear2


if __name__ == "__main__":
    # Small shapes consistent with the module: N nodes, c_dim, p_dim, hid, ft.
    N, c_dim, p_dim, hid_units, ft_size = 16, 8, 8, 32, 16

    key = jax.random.PRNGKey(0)
    k_s, k_p, k_w = jax.random.split(key, 3)
    s = jax.random.normal(k_s, (N, c_dim), jnp.float32)
    p = jax.random.normal(k_p, (N, p_dim), jnp.float32)
    params = init_params(k_w, c_dim, p_dim, hid_units, ft_size)

    out = decoder_forward(s, p, params)
    out = jax.block_until_ready(out)

    ref = decoder_reference(s, p, params)
    assert out.shape == (N, ft_size)
    assert jnp.allclose(out, ref, atol=1e-5, rtol=1e-5), "mismatch vs reference"

    # Also exercise a non-tile-multiple, larger row count to verify padding path.
    N2 = 777
    s2 = jax.random.normal(jax.random.PRNGKey(1), (N2, c_dim), jnp.float32)
    p2 = jax.random.normal(jax.random.PRNGKey(2), (N2, p_dim), jnp.float32)
    out2 = jax.block_until_ready(decoder_forward(s2, p2, params))
    ref2 = decoder_reference(s2, p2, params)
    assert out2.shape == (N2, ft_size)
    assert jnp.allclose(out2, ref2, atol=1e-5, rtol=1e-5), "mismatch vs reference (padded path)"

    print("KERNEL_OK")
</pallas_src>

<mosaic_0001>
module attributes {stable_mosaic.version = 11 : i64} {
  func.func @decoder_kernel(%arg0: i32, %arg1: memref<16x8xf32, #tpu.memory_space<vmem>>, %arg2: memref<16x8xf32, #tpu.memory_space<vmem>>, %arg3: memref<8x128xf32, #tpu.memory_space<vmem>>, %arg4: memref<8x128xf32, #tpu.memory_space<vmem>>, %arg5: memref<1x128xf32, #tpu.memory_space<vmem>>, %arg6: memref<128x128xf32, #tpu.memory_space<vmem>>, %arg7: memref<1x128xf32, #tpu.memory_space<vmem>>, %arg8: memref<128x128xf32, #tpu.memory_space<vmem>>, %arg9: memref<1x128xf32, #tpu.memory_space<vmem>>, %arg10: memref<16x128xf32, #tpu.memory_space<vmem>>) attributes {dimension_semantics = [#tpu.dimension_semantics<parallel>], iteration_bounds = array<i64: 1>, scalar_prefetch = 0 : i64, scratch_operands = 0 : i64, tpu.core_type = #tpu.core_type<tc>, window_params = [{transform_indices = @transform_0, window_bounds = array<i64: 16, 8>}, {transform_indices = @transform_1, window_bounds = array<i64: 16, 8>}, {pipeline_mode = #tpu.pipeline_mode<synchronous>, transform_indices = @transform_2, window_bounds = array<i64: 8, 128>}, {pipeline_mode = #tpu.pipeline_mode<synchronous>, transform_indices = @transform_3, window_bounds = array<i64: 8, 128>}, {pipeline_mode = #tpu.pipeline_mode<synchronous>, transform_indices = @transform_4, window_bounds = array<i64: 1, 128>}, {pipeline_mode = #tpu.pipeline_mode<synchronous>, transform_indices = @transform_5, window_bounds = array<i64: 128, 128>}, {pipeline_mode = #tpu.pipeline_mode<synchronous>, transform_indices = @transform_6, window_bounds = array<i64: 1, 128>}, {pipeline_mode = #tpu.pipeline_mode<synchronous>, transform_indices = @transform_7, window_bounds = array<i64: 128, 128>}, {pipeline_mode = #tpu.pipeline_mode<synchronous>, transform_indices = @transform_8, window_bounds = array<i64: 1, 128>}, {transform_indices = @transform_9, window_bounds = array<i64: 16, 128>}]} {
    %c0 = arith.constant 0 : index
    %c0_0 = arith.constant 0 : index
    %0 = vector.load %arg1[%c0, %c0_0] : memref<16x8xf32, #tpu.memory_space<vmem>>, vector<16x8xf32>
    %c0_1 = arith.constant 0 : index
    %c0_2 = arith.constant 0 : index
    %1 = vector.load %arg3[%c0_1, %c0_2] : memref<8x128xf32, #tpu.memory_space<vmem>>, vector<8x128xf32>
    %cst = arith.constant dense<0.000000e+00> : vector<16x128xf32>
    %2 = tpu.matmul %0, %1, %cst {dimension_numbers = #tpu.dot_dimension_numbers<[1], [0], [0], [1], [0, 0, 1, 1], [], []>} : vector<16x8xf32>, vector<8x128xf32>, vector<16x128xf32> -> vector<16x128xf32>
    %c0_3 = arith.constant 0 : index
    %c0_4 = arith.constant 0 : index
    %3 = vector.load %arg2[%c0_3, %c0_4] : memref<16x8xf32, #tpu.memory_space<vmem>>, vector<16x8xf32>
    %c0_5 = arith.constant 0 : index
    %c0_6 = arith.constant 0 : index
    %4 = vector.load %arg4[%c0_5, %c0_6] : memref<8x128xf32, #tpu.memory_space<vmem>>, vector<8x128xf32>
    %cst_7 = arith.constant dense<0.000000e+00> : vector<16x128xf32>
    %5 = tpu.matmul %3, %4, %cst_7 {dimension_numbers = #tpu.dot_dimension_numbers<[1], [0], [0], [1], [0, 0, 1, 1], [], []>} : vector<16x8xf32>, vector<8x128xf32>, vector<16x128xf32> -> vector<16x128xf32>
    %6 = arith.addf %2, %5 : vector<16x128xf32>
    %c0_8 = arith.constant 0 : index
    %c0_9 = arith.constant 0 : index
    %7 = vector.load %arg5[%c0_8, %c0_9] : memref<1x128xf32, #tpu.memory_space<vmem>>, vector<1x128xf32>
    %8 = vector.broadcast %7 : vector<1x128xf32> to vector<16x128xf32>
    %9 = arith.addf %6, %8 : vector<16x128xf32>
    %cst_10 = arith.constant 0.000000e+00 : f32
    %10 = vector.broadcast %cst_10 : f32 to vector<16x128xf32>
    %11 = arith.maximumf %9, %10 : vector<16x128xf32>
    %c0_11 = arith.constant 0 : index
    %c0_12 = arith.constant 0 : index
    %12 = vector.load %arg6[%c0_11, %c0_12] : memref<128x128xf32, #tpu.memory_space<vmem>>, vector<128x128xf32>
    %cst_13 = arith.constant dense<0.000000e+00> : vector<16x128xf32>
    %13 = tpu.matmul %11, %12, %cst_13 {dimension_numbers = #tpu.dot_dimension_numbers<[1], [0], [0], [1], [0, 0, 1, 1], [], []>} : vector<16x128xf32>, vector<128x128xf32>, vector<16x128xf32> -> vector<16x128xf32>
    %c0_14 = arith.constant 0 : index
    %c0_15 = arith.constant 0 : index
    %14 = vector.load %arg7[%c0_14, %c0_15] : memref<1x128xf32, #tpu.memory_space<vmem>>, vector<1x128xf32>
    %15 = vector.broadcast %14 : vector<1x128xf32> to vector<16x128xf32>
    %16 = arith.addf %13, %15 : vector<16x128xf32>
    %cst_16 = arith.constant 0.000000e+00 : f32
    %17 = vector.broadcast %cst_16 : f32 to vector<16x128xf32>
    %18 = arith.maximumf %16, %17 : vector<16x128xf32>
    %c0_17 = arith.constant 0 : index
    %c0_18 = arith.constant 0 : index
    %19 = vector.load %arg8[%c0_17, %c0_18] : memref<128x128xf32, #tpu.memory_space<vmem>>, vector<128x128xf32>
    %cst_19 = arith.constant dense<0.000000e+00> : vector<16x128xf32>
    %20 = tpu.matmul %18, %19, %cst_19 {dimension_numbers = #tpu.dot_dimension_numbers<[1], [0], [0], [1], [0, 0, 1, 1], [], []>} : vector<16x128xf32>, vector<128x128xf32>, vector<16x128xf32> -> vector<16x128xf32>
    %c0_20 = arith.constant 0 : index
    %c0_21 = arith.constant 0 : index
    %21 = vector.load %arg9[%c0_20, %c0_21] : memref<1x128xf32, #tpu.memory_space<vmem>>, vector<1x128xf32>
    %22 = vector.broadcast %21 : vector<1x128xf32> to vector<16x128xf32>
    %23 = arith.addf %20, %22 : vector<16x128xf32>
    %c0_22 = arith.constant 0 : index
    %c0_23 = arith.constant 0 : index
    %24 = vector.load %arg10[%c0_22, %c0_23] : memref<16x128xf32, #tpu.memory_space<vmem>>, vector<16x128xf32>
    tpu.vector_store %arg10[%c0_22, %c0_23], %23 {strides = array<i32>} : memref<16x128xf32, #tpu.memory_space<vmem>>, vector<16x128xf32>,
    return
  }
  func.func @transform_0(%arg0: i32) -> (i32, i32) {
    %c0_i32 = arith.constant 0 : i32
    %c0_i32_0 = arith.constant 0 : i32
    return %arg0, %c0_i32 : i32, i32
  }
  func.func @transform_1(%arg0: i32) -> (i32, i32) {
    %c0_i32 = arith.constant 0 : i32
    %c0_i32_0 = arith.constant 0 : i32
    return %arg0, %c0_i32 : i32, i32
  }
  func.func @transform_2(%arg0: i32) -> (i32, i32) {
    %c0_i32 = arith.constant 0 : i32
    %c0_i32_0 = arith.constant 0 : i32
    %c0_i32_1 = arith.constant 0 : i32
    return %c0_i32, %c0_i32_0 : i32, i32
  }
  func.func @transform_3(%arg0: i32) -> (i32, i32) {
    %c0_i32 = arith.constant 0 : i32
    %c0_i32_0 = arith.constant 0 : i32
    %c0_i32_1 = arith.constant 0 : i32
    return %c0_i32, %c0_i32_0 : i32, i32
  }
  func.func @transform_4(%arg0: i32) -> (i32, i32) {
    %c0_i32 = arith.constant 0 : i32
    %c0_i32_0 = arith.constant 0 : i32
    %c0_i32_1 = arith.constant 0 : i32
    return %c0_i32, %c0_i32_0 : i32, i32
  }
  func.func @transform_5(%arg0: i32) -> (i32, i32) {
    %c0_i32 = arith.constant 0 : i32
    %c0_i32_0 = arith.constant 0 : i32
    %c0_i32_1 = arith.constant 0 : i32
    return %c0_i32, %c0_i32_0 : i32, i32
  }
  func.func @transform_6(%arg0: i32) -> (i32, i32) {
    %c0_i32 = arith.constant 0 : i32
    %c0_i32_0 = arith.constant 0 : i32
    %c0_i32_1 = arith.constant 0 : i32
    return %c0_i32, %c0_i32_0 : i32, i32
  }
  func.func @transform_7(%arg0: i32) -> (i32, i32) {
    %c0_i32 = arith.constant 0 : i32
    %c0_i32_0 = arith.constant 0 : i32
    %c0_i32_1 = arith.constant 0 : i32
    return %c0_i32, %c0_i32_0 : i32, i32
  }
  func.func @transform_8(%arg0: i32) -> (i32, i32) {
    %c0_i32 = arith.constant 0 : i32
    %c0_i32_0 = arith.constant 0 : i32
    %c0_i32_1 = arith.constant 0 : i32
    return %c0_i32, %c0_i32_0 : i32, i32
  }
  func.func @transform_9(%arg0: i32) -> (i32, i32) {
    %c0_i32 = arith.constant 0 : i32
    %c0_i32_0 = arith.constant 0 : i32
    return %arg0, %c0_i32 : i32, i32
  }
}

</mosaic_0001>

<bundles_post_ra>
// kernel: tpu_custom_call.1
= control target key start
LH: loop header
LB: loop body
LE: loop exit
PB: predicated region body
PF: predicated region fallthrough
CT: control target
= control target key end

     0   :  { %14 = vsyncpa [#allocation3], 0  ;;  %s474_s0 = inlined_call_operand.vmem [shape: f32[16,8], index: 0, kind: input, shape index: {}]   ;;  %s475_s1 = inlined_call_operand.vmem [shape: f32[16,8], index: 1, kind: input, shape index: {}]   ;;  %s476_s2 = inlined_call_operand.vmem [shape: f32[8,128], index: 2, kind: input, shape index: {}]   ;;  %s477_s3 = inlined_call_operand.vmem [shape: f32[8,128], index: 3, kind: input, shape index: {}]   ;;  %s478_s4 = inlined_call_operand.vmem [shape: f32[1,128], index: 4, kind: input, shape index: {}]   ;;  %s479_s5 = inlined_call_operand.hbm [shape: f32[128,128], index: 5, kind: input, shape index: {}]   ;;  %s480_s6 = inlined_call_operand.vmem [shape: f32[1,128], index: 6, kind: input, shape index: {}]   ;;  %s481_s7 = inlined_call_operand.hbm [shape: f32[128,128], index: 7, kind: input, shape index: {}]   ;;  %s482_s8 = inlined_call_operand.vmem [shape: f32[1,128], index: 8, kind: input, shape index: {}]   ;;  %s483_s9 = inlined_call_operand.hbm [shape: f32[16,128], index: 9, kind: output, shape index: {}]  }
   0x1   :  { %15 = vsyncpa [#allocation6], 0 }
   0x2   :  { %16 = vsyncpa [#allocation4], 0  ;;  %s31_s11 = sshll.u32 %s479_s5, 4  ;;  %s370_s12 = smov [#allocation2]   ;;  %s32_s11 = int_to_ptr.hbm [resolvable:$true] %s31_s11 }
   0x3   :  { %s33_s13 = sshll.u32 %s370_s12, 4  ;;  %s46_s16 = sshll.u32 %s481_s7, 4  ;;  %s34_s13 = int_to_ptr.vmem [resolvable:$true] %s33_s13  ;;  %s47_s16 = int_to_ptr.hbm [resolvable:$true] %s46_s16 }
   0x4   :  { %s371_s17 = smov 128   ;;  %s372_s18 = smov 8  }
   0x5   :  { %39 = dma.hbm_to_vmem [thread:$0]  %s32_s11, 2048, %s34_s13, [#allocation3], %s371_s17, %s371_s17, %s372_s18  }
   0x6   :  { %s373_s19 = smov [#allocation5]  }
   0x7   :  { %s48_s20 = sshll.u32 %s373_s19, 4  ;;  %s49_s20 = int_to_ptr.vmem [resolvable:$true] %s48_s20 }
   0x8   :  { %54 = dma.hbm_to_vmem [thread:$0]  %s47_s16, 2048, %s49_s20, [#allocation6], %s371_s17, %s371_s17, %s372_s18  }
   0x9   :  { %364 = dma.done.wait [#allocation3], 2048  }
   0xa   :  { %365 = vsyncadd [#allocation3], 4294965248 }
   0xb   :  { %366 = dma.done.wait [#allocation6], 2048  }
   0xc   :  { %367 = vsyncadd [#allocation6], 4294965248  ;;  %vm71_vm0 = vcmask 64512   ;;  %v70_v0 = vld [vmem:[%s477_s3] sm:$0xff]  ;;  %v153_v4 = vld [vmem:[#allocation2 + $0x78] sm:$0xff]  ;;  %s374_s11 = smov [#allocation7]  }
   0xd   :  { %v67_v1 = vld [vmem:[%s476_s2] sm:$0xff]  ;;  %93 = vmatpush.msra.mxu0 %v70_v0  ;;  %v152_v5 = vld [vmem:[#allocation2 + $0x70] sm:$0xff]  ;;  %252 = vmatpush.msra.mxu2 %v153_v4  ;;  %v151_v6 = vld [vmem:[#allocation2 + $0x68] sm:$0xff]  ;;  %s232_s12 = sshll.u32 %s374_s11, 4  ;;  %s233_s12 = int_to_ptr.vmem [resolvable:$true] %s232_s12 }
   0xe   :  { %v68_v2 = vld [vmem:[%s475_s1] sm:$0xff]  ;;  %122 = vmatpush.msra.mxu1 %v67_v1  ;;  %v69_v8 = vld [vmem:[%s475_s1 + $0x8] sm:$0xff]  ;;  %v149_v10 = vld [vmem:[#allocation2 + $0x58] sm:$0xff] }
   0xf   :  { %v65_v3 = vld [vmem:[%s474_s0] sm:$0xff]  ;;  %248 = vmatmul.msk.f32.vlgmr.msra.gmra.mxu0 %vm71_vm0, %v68_v2  ;;  %253 = vmatpush.msra.mxu2 %v152_v5  ;;  %v66_v9 = vld [vmem:[%s474_s0 + $0x8] sm:$0xff]  ;;  %v148_v11 = vld [vmem:[#allocation2 + $0x50] sm:$0xff] }
  0x10   :  { %250 = vmatmul.msk.f32.vlgmr.msra.gmra.mxu1 %vm71_vm0, %v65_v3  ;;  %158 = vmatpush.msrb.mxu0 %v153_v4  ;;  %v150_v7 = vld [vmem:[#allocation2 + $0x60] sm:$0xff]  ;;  %v147_v12 = vld [vmem:[#allocation2 + $0x48] sm:$0xff]  ;;  %v145_v14 = vld [vmem:[#allocation2 + $0x38] sm:$0xff] }
  0x11   :  { %254 = vmatpush.msra.mxu2 %v151_v6  ;;  %v146_v13 = vld [vmem:[#allocation2 + $0x40] sm:$0xff]  ;;  %v144_v15 = vld [vmem:[#allocation2 + $0x30] sm:$0xff]  ;;  %v143_v16 = vld [vmem:[#allocation2 + $0x28] sm:$0xff] }
  0x12   :  { %159 = vmatpush.msrb.mxu0 %v152_v5  ;;  %v142_v17 = vld [vmem:[#allocation2 + $0x20] sm:$0xff]  ;;  %v141_v18 = vld [vmem:[#allocation2 + $0x18] sm:$0xff]  ;;  %v140_v19 = vld [vmem:[#allocation2 + $0x10] sm:$0xff] }
  0x13   :  { %255 = vmatpush.msra.mxu2 %v150_v7  ;;  %v139_v20 = vld [vmem:[#allocation2 + $0x8] sm:$0xff]  ;;  %v138_v21 = vld [vmem:[#allocation2] sm:$0xff]  ;;  %v198_v22 = vld [vmem:[#allocation5 + $0x78] sm:$0xff] }
  0x14   :  { %160 = vmatpush.msrb.mxu0 %v151_v6  ;;  %v197_v23 = vld [vmem:[#allocation5 + $0x70] sm:$0xff]  ;;  %203 = vmatpush.msrb.mxu1 %v198_v22  ;;  %v196_v24 = vld [vmem:[#allocation5 + $0x68] sm:$0xff]  ;;  %v195_v25 = vld [vmem:[#allocation5 + $0x60] sm:$0xff] }
  0x15   :  { %256 = vmatpush.msra.mxu2 %v149_v10  ;;  %268 = vmatpush.msra.mxu3 %v198_v22  ;;  %v194_v26 = vld [vmem:[#allocation5 + $0x58] sm:$0xff]  ;;  %v193_v27 = vld [vmem:[#allocation5 + $0x50] sm:$0xff]  ;;  %v192_v28 = vld [vmem:[#allocation5 + $0x48] sm:$0xff] }
  0x16   :  { %161 = vmatpush.msrb.mxu0 %v150_v7  ;;  %204 = vmatpush.msrb.mxu1 %v197_v23  ;;  %v191_v29 = vld [vmem:[#allocation5 + $0x40] sm:$0xff]  ;;  %v190_v30 = vld [vmem:[#allocation5 + $0x38] sm:$0xff]  ;;  %v189_v32 = vld [vmem:[#allocation5 + $0x30] sm:$0xff] }
  0x17   :  { %249 = vmatmul.msk.f32.gmra.mxu0 %vm71_vm0, %v69_v8  ;;  %257 = vmatpush.msra.mxu2 %v148_v11  ;;  %v289_v31 = vld [vmem:[%s478_s4] ss:$0 sm:$0xff]  ;;  %v188_v36 = vld [vmem:[#allocation5 + $0x28] sm:$0xff]  ;;  %v186_v40 = vld [vmem:[#allocation5 + $0x18] sm:$0xff] }
  0x18   :  { %251 = vmatmul.msk.f32.gmra.mxu1 %vm71_vm0, %v66_v9  ;;  %162 = vmatpush.msrb.mxu0 %v149_v10  ;;  %v187_v38 = vld [vmem:[#allocation5 + $0x20] sm:$0xff]  ;;  %v185_v46 = vld [vmem:[#allocation5 + $0x10] sm:$0xff]  ;;  %v184_v47 = vld [vmem:[#allocation5 + $0x8] sm:$0xff] }
  0x19   :  { %258 = vmatpush.msra.mxu2 %v147_v12  ;;  %269 = vmatpush.msra.mxu3 %v197_v23  ;;  %v183_v48 = vld [vmem:[#allocation5] sm:$0xff] }
  0x1a   :  { %163 = vmatpush.msrb.mxu0 %v148_v11  ;;  %205 = vmatpush.msrb.mxu1 %v196_v24  ;;  %v290_v49 = vld [vmem:[%s480_s6] ss:$0 sm:$0xff]  ;;  %s234_s6 = sshll.u32 %s483_s9, 4  ;;  %s235_s6 = int_to_ptr.hbm [resolvable:$true] %s234_s6 }
  0x1b   :  { %259 = vmatpush.msra.mxu2 %v146_v13  ;;  %270 = vmatpush.msra.mxu3 %v196_v24  ;;  %v291_v56 = vld [vmem:[%s482_s8] ss:$0 sm:$0xff] }
  0x1c   :  { %164 = vmatpush.msrb.mxu0 %v147_v12  ;;  %206 = vmatpush.msrb.mxu1 %v195_v25 }
  0x1d   :  { %260 = vmatpush.msra.mxu2 %v145_v14  ;;  %271 = vmatpush.msra.mxu3 %v195_v25 }
  0x1e   :  { %165 = vmatpush.msrb.mxu0 %v146_v13  ;;  %207 = vmatpush.msrb.mxu1 %v194_v26 }
  0x1f   :  { %261 = vmatpush.msra.mxu2 %v144_v15  ;;  %272 = vmatpush.msra.mxu3 %v194_v26 }
  0x20   :  { %166 = vmatpush.msrb.mxu0 %v145_v14  ;;  %208 = vmatpush.msrb.mxu1 %v193_v27 }
  0x21   :  { %262 = vmatpush.msra.mxu2 %v143_v16  ;;  %273 = vmatpush.msra.mxu3 %v193_v27 }
  0x22   :  { %167 = vmatpush.msrb.mxu0 %v144_v15  ;;  %209 = vmatpush.msrb.mxu1 %v192_v28 }
  0x23   :  { %263 = vmatpush.msra.mxu2 %v142_v17  ;;  %274 = vmatpush.msra.mxu3 %v192_v28 }
  0x24   :  { %168 = vmatpush.msrb.mxu0 %v143_v16  ;;  %210 = vmatpush.msrb.mxu1 %v191_v29 }
  0x25   :  { %264 = vmatpush.msra.mxu2 %v141_v18  ;;  %275 = vmatpush.msra.mxu3 %v191_v29 }
  0x26   :  { %169 = vmatpush.msrb.mxu0 %v142_v17  ;;  %211 = vmatpush.msrb.mxu1 %v190_v30 }
  0x27   :  { %265 = vmatpush.msra.mxu2 %v140_v19  ;;  %276 = vmatpush.msra.mxu3 %v190_v30 }
  0x28   :  { %170 = vmatpush.msrb.mxu0 %v141_v18  ;;  %212 = vmatpush.msrb.mxu1 %v189_v32 }
  0x29   :  { %266 = vmatpush.msra.mxu2 %v139_v20  ;;  %277 = vmatpush.msra.mxu3 %v189_v32 }
  0x2a   :  { %171 = vmatpush.msrb.mxu0 %v140_v19  ;;  %213 = vmatpush.msrb.mxu1 %v188_v36 }
  0x2b   :  { %267 = vmatpush.msra.mxu2 %v138_v21  ;;  %278 = vmatpush.msra.mxu3 %v188_v36 }
  0x2c   :  { %172 = vmatpush.msrb.mxu0 %v139_v20  ;;  %214 = vmatpush.msrb.mxu1 %v187_v38 }
  0x2d   :  { %279 = vmatpush.msra.mxu3 %v187_v38 }
  0x2e   :  { %173 = vmatpush.msrb.mxu0 %v138_v21  ;;  %215 = vmatpush.msrb.mxu1 %v186_v40 }
  0x2f   :  { %280 = vmatpush.msra.mxu3 %v186_v40 }
  0x30   :  { %216 = vmatpush.msrb.mxu1 %v185_v46 }
  0x31   :  { %281 = vmatpush.msra.mxu3 %v185_v46 }
  0x32   :  { %217 = vmatpush.msrb.mxu1 %v184_v47 }
  0x33   :  { %282 = vmatpush.msra.mxu3 %v184_v47 }
  0x34   :  { %218 = vmatpush.msrb.mxu1 %v183_v48 }
  0x35   :  { %283 = vmatpush.msra.mxu3 %v183_v48 }
  0x8c   :  { %v95_v33 = vpop.f32.mrf.mxu0 }
  0x8d   :  { %v124_v34 = vpop.f32.mrf.mxu1 }
  0x8e   :  { %v125_v35 = vadd.f32 %v124_v34, %v95_v33 }
  0x90   :  { %v134_v37 = vadd.f32 %v289_v31, %v125_v35 }
  0x92   :  { %v136_v39 = vmax.f32 %v134_v37, 0.0 }
  0x94   :  { %174 = vmatmul.f32.vlgmr.msrb.gmra.mxu0 %v136_v39  ;;  %v98_v41 = vpop.f32.mrf.mxu0 }
  0x95   :  { %v127_v42 = vpop.f32.mrf.mxu1 }
  0x96   :  { %v128_v43 = vadd.f32 %v127_v42, %v98_v41 }
  0x98   :  { %v135_v44 = vadd.f32 %v289_v31, %v128_v43 }
  0x9a   :  { %v137_v45 = vmax.f32 %v135_v44, 0.0 }
  0x9c   :  { %177 = vmatmul.f32.vlgmr.msra.gmra.mxu2 %v137_v45 }
 0x111   :  { %v175_v50 = vpop.f32.mrf.mxu0 }
 0x112   :  { %v176_v51 = vadd.f32 %v290_v49, %v175_v50 }
 0x114   :  { %v181_v52 = vmax.f32 %v176_v51, 0.0 }
 0x116   :  { %219 = vmatmul.f32.vlgmr.msrb.gmra.mxu1 %v181_v52 }
 0x11f   :  { %v178_v53 = vpop.f32.mrf.mxu2 }
 0x120   :  { %v179_v54 = vadd.f32 %v290_v49, %v178_v53 }
 0x122   :  { %v182_v55 = vmax.f32 %v179_v54, 0.0 }
 0x124   :  { %222 = vmatmul.f32.vlgmr.msra.gmra.mxu3 %v182_v55 }
 0x193   :  { %v220_v57 = vpop.f32.mrf.mxu1 }
 0x194   :  { %v221_v58 = vadd.f32 %v291_v56, %v220_v57 }
 0x196   :  { %226 = vst [vmem:[#allocation7] sm:$0xff] %v221_v58 }
 0x1a7   :  { %v223_v59 = vpop.f32.mrf.mxu3 }
 0x1a8   :  { %v224_v60 = vadd.f32 %v291_v56, %v223_v59 }
 0x1aa   :  { %227 = vst [vmem:[#allocation7 + $0x8] sm:$0xff] %v224_v60 }
 0x1ab   :  { %240 = dma.vmem_to_hbm [thread:$0]  %s233_s12, 256, %s235_s6, [#allocation4], %s371_s17, %s371_s17, %s372_s18  }
 0x1ac   :  { %368 = dma.done.wait [#allocation4], 256  }
 0x1ad   :  { %369 = vsyncadd [#allocation4], 4294967040 }
 0x1ae   :  { %245 = vsyncpa [#allocation3], 1 }
 0x1af   :  { %246 = vsyncpa [#allocation6], 1 }
 0x1b0   :  { %247 = vsyncpa [#allocation4], 1 }

</bundles_post_ra>
